<compile_context>
chip_gen: v7x
topology: tpu7x:2x2x1
jax: 0.10.0
libtpu: 0.0.40
codegen_flags: <defaults>
</compile_context>

<pallas_src>
import functools

import jax
import jax.numpy as jnp
from jax import lax
from jax.experimental import pallas as pl
from jax.experimental.pallas import tpu as pltpu

_CompilerParams = getattr(pltpu, "CompilerParams", None)
if _CompilerParams is None:  # older jax releases
    _CompilerParams = getattr(pltpu, "TPUCompilerParams")


def _round_up(a, m):
    return (a + m - 1) // m * m


# ---------------------------------------------------------------------------
# Fused whole-VAE Pallas kernel
# ---------------------------------------------------------------------------
def _vae_fused_kernel(x_ref, eps_ref,
                      w1_ref, b1_ref, w2_ref, b2_ref, wml_ref, bml_ref,
                      wd_ref, bd_ref, wt2_ref, bt2_ref, wt1_ref, bt1_ref,
                      mulv_ref, recon_ref, *, training):
    f32 = jnp.float32
    bf16 = jnp.bfloat16

    def dense(a, w_ref, b_ref, act=None):
        # bf16 MXU inputs, f32 accumulation, f32 elementwise epilogue.
        acc = jnp.dot(a.astype(bf16), w_ref[...], preferred_element_type=f32)
        acc = acc + b_ref[...]                      # (1, N) broadcasts over (TB, N)
        if act == "relu":
            acc = jnp.maximum(acc, 0.0)
        elif act == "sigmoid":
            acc = jax.nn.sigmoid(acc)
        return acc

    # ---- encoder ----
    h1 = dense(x_ref[...], w1_ref, b1_ref, "relu")      # conv1 (densified) + ReLU
    h2 = dense(h1, w2_ref, b2_ref, "relu")              # conv2 (densified) + ReLU
    ml = dense(h2, wml_ref, bml_ref, None)              # fused fc_mu | fc_logvar
    mulv_ref[...] = ml

    # ---- reparameterization (fused — no extra kernel / HBM round-trip) ----
    lat = mulv_ref.shape[-1] // 2
    mu = ml[:, :lat]
    if training:
        logvar = ml[:, lat:]
        latent = mu + eps_ref[...] * jnp.exp(0.5 * logvar)
    else:
        latent = mu

    # ---- decoder ----
    d = dense(latent, wd_ref, bd_ref, None)             # decoder fc
    u2 = dense(d, wt2_ref, bt2_ref, "relu")             # convT2 (densified) + ReLU
    recon_ref[...] = dense(u2, wt1_ref, bt1_ref, "sigmoid")   # convT1 + Sigmoid


# ---------------------------------------------------------------------------
# One-time parameter preprocessing (hoisted out of the forward pass)
# ---------------------------------------------------------------------------
def prepare_params(params, colour_channels, c, encoder_out_size, latent_dims):
    """Fold each conv / conv-transpose layer into a dense (Din, Dout) matrix
    acting on NCHW-flattened activations, cast MXU operands to bf16, and fuse
    fc_mu/fc_logvar.  Runs once, outside the forward pass."""
    del latent_dims  # implied by fc weight shapes
    f32, bf16 = jnp.float32, jnp.bfloat16
    h_in = 4 * encoder_out_size  # two stride-2 convs: H -> H/2 -> H/4

    def conv_mat(w, stride, pad, cin, hin, win):
        d_in = cin * hin * win
        basis = jnp.eye(d_in, dtype=f32).reshape(d_in, cin, hin, win)
        out = lax.conv_general_dilated(
            basis, w, (stride, stride), ((pad, pad), (pad, pad)),
            dimension_numbers=("NCHW", "OIHW", "NCHW"))
        return out.reshape(d_in, -1), out.shape[2] * out.shape[3]

    def convT_mat(w, stride, pad, cin, hin, win):
        # PyTorch ConvTranspose2d(Cin,Cout,KH,KW) == forward conv with the
        # spatially flipped, channel-swapped kernel on an lhs-dilated input.
        kh, kw = w.shape[2], w.shape[3]
        w_eq = jnp.transpose(w[:, :, ::-1, ::-1], (1, 0, 2, 3))  # (Cout,Cin,KH,KW)
        d_in = cin * hin * win
        basis = jnp.eye(d_in, dtype=f32).reshape(d_in, cin, hin, win)
        out = lax.conv_general_dilated(
            basis, w_eq, (1, 1),
            ((kh - 1 - pad, kh - 1 - pad), (kw - 1 - pad, kw - 1 - pad)),
            lhs_dilation=(stride, stride),
            dimension_numbers=("NCHW", "OIHW", "NCHW"))
        return out.reshape(d_in, -1), out.shape[2] * out.shape[3]

    m1, hw1 = conv_mat(params["enc_conv1_w"], 2, 1, colour_channels, h_in, h_in)
    m2, hw2 = conv_mat(params["enc_conv2_w"], 2, 1, c, h_in // 2, h_in // 2)
    mt2, hwt2 = convT_mat(params["dec_convT2_w"], 2, 1, 2 * c,
                          encoder_out_size, encoder_out_size)
    mt1, hwt1 = convT_mat(params["dec_convT1_w"], 2, 1, c,
                          2 * encoder_out_size, 2 * encoder_out_size)

    def bias_row(b, reps):  # broadcast conv bias over spatial (CHW flatten order)
        return jnp.repeat(b, reps).reshape(1, -1).astype(f32)

    return {
        "w1": m1.astype(bf16), "b1": bias_row(params["enc_conv1_b"], hw1),
        "w2": m2.astype(bf16), "b2": bias_row(params["enc_conv2_b"], hw2),
        # fc_mu / fc_logvar fused into one matmul (N = 2*latent_dims)
        "wml": jnp.concatenate(
            [params["fc_mu_w"], params["fc_logvar_w"]], axis=1).astype(bf16),
        "bml": jnp.concatenate(
            [params["fc_mu_b"], params["fc_logvar_b"]]).reshape(1, -1).astype(f32),
        "wd": params["dec_fc_w"].astype(bf16),
        "bd": params["dec_fc_b"].reshape(1, -1).astype(f32),
        "wt2": mt2.astype(bf16), "bt2": bias_row(params["dec_convT2_b"], hwt2),
        "wt1": mt1.astype(bf16), "bt1": bias_row(params["dec_convT1_b"], hwt1),
    }


# ---------------------------------------------------------------------------
# Forward pass: a single pallas_call
# ---------------------------------------------------------------------------
def vae_forward(prepped, x_nchw, eps, training=True, tb=128):
    B, cc, H, W = x_nchw.shape
    d_in = cc * H * W
    d_recon = prepped["wt1"].shape[1]
    two_l = prepped["wml"].shape[1]
    lat = two_l // 2

    # Batch is the only growing dimension: tile it (sublane-aligned), pad with
    # zero rows, and let the grid pipeline / megacore-shard over batch tiles.
    tb = min(tb, _round_up(B, 8))
    b_pad = _round_up(B, tb)
    x_flat = x_nchw.reshape(B, -1).astype(jnp.bfloat16)   # == torch .view(B,-1)
    x_flat = jnp.pad(x_flat, ((0, b_pad - B), (0, 0)))
    eps_p = jnp.pad(eps.astype(jnp.float32), ((0, b_pad - B), (0, 0)))

    def row_spec(n):
        return pl.BlockSpec((tb, n), lambda i: (i, 0))

    def full_spec(a):
        return pl.BlockSpec(a.shape, lambda i: (0, 0))

    kernel = functools.partial(_vae_fused_kernel, training=training)
    mulv, recon_flat = pl.pallas_call(
        kernel,
        out_shape=(jax.ShapeDtypeStruct((b_pad, two_l), jnp.float32),
                   jax.ShapeDtypeStruct((b_pad, d_recon), jnp.float32)),
        grid=(b_pad // tb,),
        in_specs=[row_spec(d_in), row_spec(lat),
                  full_spec(prepped["w1"]), full_spec(prepped["b1"]),
                  full_spec(prepped["w2"]), full_spec(prepped["b2"]),
                  full_spec(prepped["wml"]), full_spec(prepped["bml"]),
                  full_spec(prepped["wd"]), full_spec(prepped["bd"]),
                  full_spec(prepped["wt2"]), full_spec(prepped["bt2"]),
                  full_spec(prepped["wt1"]), full_spec(prepped["bt1"])],
        out_specs=(row_spec(two_l), row_spec(d_recon)),
        compiler_params=_CompilerParams(
            dimension_semantics=("parallel",),          # batch tiles independent
            vmem_limit_bytes=32 * 1024 * 1024),          # explicit, v7x-safe
    )(x_flat, eps_p,
      prepped["w1"], prepped["b1"], prepped["w2"], prepped["b2"],
      prepped["wml"], prepped["bml"], prepped["wd"], prepped["bd"],
      prepped["wt2"], prepped["bt2"], prepped["wt1"], prepped["bt1"])

    mu = mulv[:B, :lat]
    logvar = mulv[:B, lat:]
    x_recon = recon_flat[:B].reshape(B, cc, H, W)
    return x_recon, mu, logvar


# ---------------------------------------------------------------------------
# Pure-JAX reference (PyTorch semantics) for correctness checking only
# ---------------------------------------------------------------------------
def vae_reference(params, x, eps, encoder_out_size, training=True):
    def conv(x, w, b, stride, pad):
        y = lax.conv_general_dilated(x, w, (stride, stride),
                                     ((pad, pad), (pad, pad)),
                                     dimension_numbers=("NCHW", "OIHW", "NCHW"))
        return y + b[None, :, None, None]

    def convT(x, w, b, stride, pad):
        kh, kw = w.shape[2], w.shape[3]
        w_eq = jnp.transpose(w[:, :, ::-1, ::-1], (1, 0, 2, 3))
        y = lax.conv_general_dilated(
            x, w_eq, (1, 1),
            ((kh - 1 - pad, kh - 1 - pad), (kw - 1 - pad, kw - 1 - pad)),
            lhs_dilation=(stride, stride),
            dimension_numbers=("NCHW", "OIHW", "NCHW"))
        return y + b[None, :, None, None]

    h1 = jax.nn.relu(conv(x, params["enc_conv1_w"], params["enc_conv1_b"], 2, 1))
    h2 = jax.nn.relu(conv(h1, params["enc_conv2_w"], params["enc_conv2_b"], 2, 1))
    B = x.shape[0]
    flat = h2.reshape(B, -1)
    mu = flat @ params["fc_mu_w"] + params["fc_mu_b"]
    logvar = flat @ params["fc_logvar_w"] + params["fc_logvar_b"]
    latent = mu + eps * jnp.exp(0.5 * logvar) if training else mu
    d = latent @ params["dec_fc_w"] + params["dec_fc_b"]
    c2 = params["dec_convT2_w"].shape[0]
    d = d.reshape(B, c2, encoder_out_size, encoder_out_size)
    u2 = jax.nn.relu(convT(d, params["dec_convT2_w"], params["dec_convT2_b"], 2, 1))
    recon = jax.nn.sigmoid(convT(u2, params["dec_convT1_w"],
                                 params["dec_convT1_b"], 2, 1))
    return recon, mu, logvar


def init_params(key, colour_channels, c, encoder_out_size, latent_dims):
    keys = jax.random.split(key, 14)
    s = 0.1
    feat = 2 * c * encoder_out_size * encoder_out_size
    n = lambda k, shape: s * jax.random.normal(k, shape, jnp.float32)
    return {
        "enc_conv1_w": n(keys[0], (c, colour_channels, 4, 4)),
        "enc_conv1_b": n(keys[1], (c,)),
        "enc_conv2_w": n(keys[2], (2 * c, c, 4, 4)),
        "enc_conv2_b": n(keys[3], (2 * c,)),
        "fc_mu_w": n(keys[4], (feat, latent_dims)),
        "fc_mu_b": n(keys[5], (latent_dims,)),
        "fc_logvar_w": n(keys[6], (feat, latent_dims)),
        "fc_logvar_b": n(keys[7], (latent_dims,)),
        "dec_fc_w": n(keys[8], (latent_dims, feat)),
        "dec_fc_b": n(keys[9], (feat,)),
        "dec_convT2_w": n(keys[10], (2 * c, c, 4, 4)),
        "dec_convT2_b": n(keys[11], (c,)),
        "dec_convT1_w": n(keys[12], (c, colour_channels, 4, 4)),
        "dec_convT1_b": n(keys[13], (colour_channels,)),
    }


if __name__ == "__main__":
    key = jax.random.PRNGKey(0)
    kx, keps, kp = jax.random.split(key, 3)

    B, colour_channels, H, W = 2, 1, 16, 16
    c = 4
    encoder_out_size = 4       # 16 -> 8 -> 4 after two stride-2 convs
    latent_dims = 8

    x = jax.random.uniform(kx, (B, colour_channels, H, W), jnp.float32)
    eps = jax.random.normal(keps, (B, latent_dims), jnp.float32)
    params = init_params(kp, colour_channels, c, encoder_out_size, latent_dims)

    # one-time weight preprocessing (outside the forward pass)
    prepped = prepare_params(params, colour_channels, c, encoder_out_size,
                             latent_dims)

    fwd = jax.jit(vae_forward, static_argnames=("training",))
    x_recon, mu, logvar = fwd(prepped, x, eps, training=True)
    jax.block_until_ready((x_recon, mu, logvar))

    # correctness vs the pure-JAX PyTorch-semantics reference
    r_recon, r_mu, r_logvar = vae_reference(params, x, eps, encoder_out_size,
                                            training=True)
    assert x_recon.shape == (B, colour_channels, H, W)
    assert mu.shape == (B, latent_dims) and logvar.shape == (B, latent_dims)
    assert bool(jnp.all(jnp.isfinite(x_recon)))
    for got, want in ((x_recon, r_recon), (mu, r_mu), (logvar, r_logvar)):
        assert float(jnp.max(jnp.abs(got - want))) < 5e-2

    print("KERNEL_OK")
</pallas_src>

<mosaic_0001>
module attributes {stable_mosaic.version = 11 : i64} {
  func.func @_vae_fused_kernel(%arg0: i32, %arg1: memref<8x256xbf16, #tpu.memory_space<vmem>>, %arg2: memref<8x8xf32, #tpu.memory_space<vmem>>, %arg3: memref<256x256xbf16, #tpu.memory_space<vmem>>, %arg4: memref<1x256xf32, #tpu.memory_space<vmem>>, %arg5: memref<256x128xbf16, #tpu.memory_space<vmem>>, %arg6: memref<1x128xf32, #tpu.memory_space<vmem>>, %arg7: memref<128x16xbf16, #tpu.memory_space<vmem>>, %arg8: memref<1x16xf32, #tpu.memory_space<vmem>>, %arg9: memref<8x128xbf16, #tpu.memory_space<vmem>>, %arg10: memref<1x128xf32, #tpu.memory_space<vmem>>, %arg11: memref<128x256xbf16, #tpu.memory_space<vmem>>, %arg12: memref<1x256xf32, #tpu.memory_space<vmem>>, %arg13: memref<256x256xbf16, #tpu.memory_space<vmem>>, %arg14: memref<1x256xf32, #tpu.memory_space<vmem>>, %arg15: memref<8x16xf32, #tpu.memory_space<vmem>>, %arg16: memref<8x256xf32, #tpu.memory_space<vmem>>) attributes {dimension_semantics = [#tpu.dimension_semantics<parallel>], iteration_bounds = array<i64: 1>, scalar_prefetch = 0 : i64, scratch_operands = 0 : i64, tpu.core_type = #tpu.core_type<tc>, window_params = [{transform_indices = @transform_0, window_bounds = array<i64: 8, 256>}, {transform_indices = @transform_1, window_bounds = array<i64: 8, 8>}, {pipeline_mode = #tpu.pipeline_mode<synchronous>, transform_indices = @transform_2, window_bounds = array<i64: 256, 256>}, {pipeline_mode = #tpu.pipeline_mode<synchronous>, transform_indices = @transform_3, window_bounds = array<i64: 1, 256>}, {pipeline_mode = #tpu.pipeline_mode<synchronous>, transform_indices = @transform_4, window_bounds = array<i64: 256, 128>}, {pipeline_mode = #tpu.pipeline_mode<synchronous>, transform_indices = @transform_5, window_bounds = array<i64: 1, 128>}, {pipeline_mode = #tpu.pipeline_mode<synchronous>, transform_indices = @transform_6, window_bounds = array<i64: 128, 16>}, {pipeline_mode = #tpu.pipeline_mode<synchronous>, transform_indices = @transform_7, window_bounds = array<i64: 1, 16>}, {pipeline_mode = #tpu.pipeline_mode<synchronous>, transform_indices = @transform_8, window_bounds = array<i64: 8, 128>}, {pipeline_mode = #tpu.pipeline_mode<synchronous>, transform_indices = @transform_9, window_bounds = array<i64: 1, 128>}, {pipeline_mode = #tpu.pipeline_mode<synchronous>, transform_indices = @transform_10, window_bounds = array<i64: 128, 256>}, {pipeline_mode = #tpu.pipeline_mode<synchronous>, transform_indices = @transform_11, window_bounds = array<i64: 1, 256>}, {pipeline_mode = #tpu.pipeline_mode<synchronous>, transform_indices = @transform_12, window_bounds = array<i64: 256, 256>}, {pipeline_mode = #tpu.pipeline_mode<synchronous>, transform_indices = @transform_13, window_bounds = array<i64: 1, 256>}, {transform_indices = @transform_14, window_bounds = array<i64: 8, 16>}, {transform_indices = @transform_15, window_bounds = array<i64: 8, 256>}]} {
    %c0 = arith.constant 0 : index
    %c0_0 = arith.constant 0 : index
    %0 = vector.load %arg1[%c0, %c0_0] : memref<8x256xbf16, #tpu.memory_space<vmem>>, vector<8x256xbf16>
    %c0_1 = arith.constant 0 : index
    %c0_2 = arith.constant 0 : index
    %1 = vector.load %arg3[%c0_1, %c0_2] : memref<256x256xbf16, #tpu.memory_space<vmem>>, vector<256x256xbf16>
    %cst = arith.constant dense<0.000000e+00> : vector<8x256xf32>
    %2 = tpu.matmul %0, %1, %cst {dimension_numbers = #tpu.dot_dimension_numbers<[1], [0], [0], [1], [0, 0, 1, 1], [], []>} : vector<8x256xbf16>, vector<256x256xbf16>, vector<8x256xf32> -> vector<8x256xf32>
    %c0_3 = arith.constant 0 : index
    %c0_4 = arith.constant 0 : index
    %3 = vector.load %arg4[%c0_3, %c0_4] : memref<1x256xf32, #tpu.memory_space<vmem>>, vector<1x256xf32>
    %4 = vector.broadcast %3 : vector<1x256xf32> to vector<8x256xf32>
    %5 = arith.addf %2, %4 : vector<8x256xf32>
    %cst_5 = arith.constant 0.000000e+00 : f32
    %6 = vector.broadcast %cst_5 : f32 to vector<8x256xf32>
    %7 = arith.maximumf %5, %6 : vector<8x256xf32>
    %8 = arith.truncf %7 : vector<8x256xf32> to vector<8x256xbf16>
    %c0_6 = arith.constant 0 : index
    %c0_7 = arith.constant 0 : index
    %9 = vector.load %arg5[%c0_6, %c0_7] : memref<256x128xbf16, #tpu.memory_space<vmem>>, vector<256x128xbf16>
    %cst_8 = arith.constant dense<0.000000e+00> : vector<8x128xf32>
    %10 = tpu.matmul %8, %9, %cst_8 {dimension_numbers = #tpu.dot_dimension_numbers<[1], [0], [0], [1], [0, 0, 1, 1], [], []>} : vector<8x256xbf16>, vector<256x128xbf16>, vector<8x128xf32> -> vector<8x128xf32>
    %c0_9 = arith.constant 0 : index
    %c0_10 = arith.constant 0 : index
    %11 = vector.load %arg6[%c0_9, %c0_10] : memref<1x128xf32, #tpu.memory_space<vmem>>, vector<1x128xf32>
    %12 = vector.broadcast %11 : vector<1x128xf32> to vector<8x128xf32>
    %13 = arith.addf %10, %12 : vector<8x128xf32>
    %cst_11 = arith.constant 0.000000e+00 : f32
    %14 = vector.broadcast %cst_11 : f32 to vector<8x128xf32>
    %15 = arith.maximumf %13, %14 : vector<8x128xf32>
    %16 = arith.truncf %15 : vector<8x128xf32> to vector<8x128xbf16>
    %c0_12 = arith.constant 0 : index
    %c0_13 = arith.constant 0 : index
    %17 = vector.load %arg7[%c0_12, %c0_13] : memref<128x16xbf16, #tpu.memory_space<vmem>>, vector<128x16xbf16>
    %cst_14 = arith.constant dense<0.000000e+00> : vector<8x16xf32>
    %18 = tpu.matmul %16, %17, %cst_14 {dimension_numbers = #tpu.dot_dimension_numbers<[1], [0], [0], [1], [0, 0, 1, 1], [], []>} : vector<8x128xbf16>, vector<128x16xbf16>, vector<8x16xf32> -> vector<8x16xf32>
    %c0_15 = arith.constant 0 : index
    %c0_16 = arith.constant 0 : index
    %19 = vector.load %arg8[%c0_15, %c0_16] : memref<1x16xf32, #tpu.memory_space<vmem>>, vector<1x16xf32>
    %20 = vector.broadcast %19 : vector<1x16xf32> to vector<8x16xf32>
    %21 = arith.addf %18, %20 : vector<8x16xf32>
    %c0_17 = arith.constant 0 : index
    %c0_18 = arith.constant 0 : index
    %22 = vector.load %arg15[%c0_17, %c0_18] : memref<8x16xf32, #tpu.memory_space<vmem>>, vector<8x16xf32>
    tpu.vector_store %arg15[%c0_17, %c0_18], %21 {strides = array<i32>} : memref<8x16xf32, #tpu.memory_space<vmem>>, vector<8x16xf32>,
    %23 = vector.extract_strided_slice %21 {offsets = [0, 0], sizes = [8, 8], strides = [1, 1]} : vector<8x16xf32> to vector<8x8xf32>
    %24 = vector.extract_strided_slice %21 {offsets = [0, 8], sizes = [8, 8], strides = [1, 1]} : vector<8x16xf32> to vector<8x8xf32>
    %c0_19 = arith.constant 0 : index
    %c0_20 = arith.constant 0 : index
    %25 = vector.load %arg2[%c0_19, %c0_20] : memref<8x8xf32, #tpu.memory_space<vmem>>, vector<8x8xf32>
    %cst_21 = arith.constant 5.000000e-01 : f32
    %26 = vector.broadcast %cst_21 : f32 to vector<8x8xf32>
    %27 = arith.mulf %26, %24 : vector<8x8xf32>
    %28 = math.exp %27 : vector<8x8xf32>
    %29 = arith.mulf %25, %28 : vector<8x8xf32>
    %30 = arith.addf %23, %29 : vector<8x8xf32>
    %31 = arith.truncf %30 : vector<8x8xf32> to vector<8x8xbf16>
    %c0_22 = arith.constant 0 : index
    %c0_23 = arith.constant 0 : index
    %32 = vector.load %arg9[%c0_22, %c0_23] : memref<8x128xbf16, #tpu.memory_space<vmem>>, vector<8x128xbf16>
    %cst_24 = arith.constant dense<0.000000e+00> : vector<8x128xf32>
    %33 = tpu.matmul %31, %32, %cst_24 {dimension_numbers = #tpu.dot_dimension_numbers<[1], [0], [0], [1], [0, 0, 1, 1], [], []>} : vector<8x8xbf16>, vector<8x128xbf16>, vector<8x128xf32> -> vector<8x128xf32>
    %c0_25 = arith.constant 0 : index
    %c0_26 = arith.constant 0 : index
    %34 = vector.load %arg10[%c0_25, %c0_26] : memref<1x128xf32, #tpu.memory_space<vmem>>, vector<1x128xf32>
    %35 = vector.broadcast %34 : vector<1x128xf32> to vector<8x128xf32>
    %36 = arith.addf %33, %35 : vector<8x128xf32>
    %37 = arith.truncf %36 : vector<8x128xf32> to vector<8x128xbf16>
    %c0_27 = arith.constant 0 : index
    %c0_28 = arith.constant 0 : index
    %38 = vector.load %arg11[%c0_27, %c0_28] : memref<128x256xbf16, #tpu.memory_space<vmem>>, vector<128x256xbf16>
    %cst_29 = arith.constant dense<0.000000e+00> : vector<8x256xf32>
    %39 = tpu.matmul %37, %38, %cst_29 {dimension_numbers = #tpu.dot_dimension_numbers<[1], [0], [0], [1], [0, 0, 1, 1], [], []>} : vector<8x128xbf16>, vector<128x256xbf16>, vector<8x256xf32> -> vector<8x256xf32>
    %c0_30 = arith.constant 0 : index
    %c0_31 = arith.constant 0 : index
    %40 = vector.load %arg12[%c0_30, %c0_31] : memref<1x256xf32, #tpu.memory_space<vmem>>, vector<1x256xf32>
    %41 = vector.broadcast %40 : vector<1x256xf32> to vector<8x256xf32>
    %42 = arith.addf %39, %41 : vector<8x256xf32>
    %cst_32 = arith.constant 0.000000e+00 : f32
    %43 = vector.broadcast %cst_32 : f32 to vector<8x256xf32>
    %44 = arith.maximumf %42, %43 : vector<8x256xf32>
    %45 = arith.truncf %44 : vector<8x256xf32> to vector<8x256xbf16>
    %c0_33 = arith.constant 0 : index
    %c0_34 = arith.constant 0 : index
    %46 = vector.load %arg13[%c0_33, %c0_34] : memref<256x256xbf16, #tpu.memory_space<vmem>>, vector<256x256xbf16>
    %cst_35 = arith.constant dense<0.000000e+00> : vector<8x256xf32>
    %47 = tpu.matmul %45, %46, %cst_35 {dimension_numbers = #tpu.dot_dimension_numbers<[1], [0], [0], [1], [0, 0, 1, 1], [], []>} : vector<8x256xbf16>, vector<256x256xbf16>, vector<8x256xf32> -> vector<8x256xf32>
    %c0_36 = arith.constant 0 : index
    %c0_37 = arith.constant 0 : index
    %48 = vector.load %arg14[%c0_36, %c0_37] : memref<1x256xf32, #tpu.memory_space<vmem>>, vector<1x256xf32>
    %49 = vector.broadcast %48 : vector<1x256xf32> to vector<8x256xf32>
    %50 = arith.addf %47, %49 : vector<8x256xf32>
    %51 = arith.negf %50 : vector<8x256xf32>
    %52 = math.exp %51 : vector<8x256xf32>
    %cst_38 = arith.constant 1.000000e+00 : f32
    %53 = vector.broadcast %cst_38 : f32 to vector<8x256xf32>
    %54 = arith.addf %53, %52 : vector<8x256xf32>
    %55 = arith.divf %53, %54 : vector<8x256xf32>
    %c0_39 = arith.constant 0 : index
    %c0_40 = arith.constant 0 : index
    %56 = vector.load %arg16[%c0_39, %c0_40] : memref<8x256xf32, #tpu.memory_space<vmem>>, vector<8x256xf32>
    tpu.vector_store %arg16[%c0_39, %c0_40], %55 {strides = array<i32>} : memref<8x256xf32, #tpu.memory_space<vmem>>, vector<8x256xf32>,
    return
  }
  func.func @transform_0(%arg0: i32) -> (i32, i32) {
    %c0_i32 = arith.constant 0 : i32
    %c0_i32_0 = arith.constant 0 : i32
    return %arg0, %c0_i32 : i32, i32
  }
  func.func @transform_1(%arg0: i32) -> (i32, i32) {
    %c0_i32 = arith.constant 0 : i32
    %c0_i32_0 = arith.constant 0 : i32
    return %arg0, %c0_i32 : i32, i32
  }
  func.func @transform_2(%arg0: i32) -> (i32, i32) {
    %c0_i32 = arith.constant 0 : i32
    %c0_i32_0 = arith.constant 0 : i32
    %c0_i32_1 = arith.constant 0 : i32
    return %c0_i32, %c0_i32_0 : i32, i32
  }
  func.func @transform_3(%arg0: i32) -> (i32, i32) {
    %c0_i32 = arith.constant 0 : i32
    %c0_i32_0 = arith.constant 0 : i32
    %c0_i32_1 = arith.constant 0 : i32
    return %c0_i32, %c0_i32_0 : i32, i32
  }
  func.func @transform_4(%arg0: i32) -> (i32, i32) {
    %c0_i32 = arith.constant 0 : i32
    %c0_i32_0 = arith.constant 0 : i32
    %c0_i32_1 = arith.constant 0 : i32
    return %c0_i32, %c0_i32_0 : i32, i32
  }
  func.func @transform_5(%arg0: i32) -> (i32, i32) {
    %c0_i32 = arith.constant 0 : i32
    %c0_i32_0 = arith.constant 0 : i32
    %c0_i32_1 = arith.constant 0 : i32
    return %c0_i32, %c0_i32_0 : i32, i32
  }
  func.func @transform_6(%arg0: i32) -> (i32, i32) {
    %c0_i32 = arith.constant 0 : i32
    %c0_i32_0 = arith.constant 0 : i32
    %c0_i32_1 = arith.constant 0 : i32
    return %c0_i32, %c0_i32_0 : i32, i32
  }
  func.func @transform_7(%arg0: i32) -> (i32, i32) {
    %c0_i32 = arith.constant 0 : i32
    %c0_i32_0 = arith.constant 0 : i32
    %c0_i32_1 = arith.constant 0 : i32
    return %c0_i32, %c0_i32_0 : i32, i32
  }
  func.func @transform_8(%arg0: i32) -> (i32, i32) {
    %c0_i32 = arith.constant 0 : i32
    %c0_i32_0 = arith.constant 0 : i32
    %c0_i32_1 = arith.constant 0 : i32
    return %c0_i32, %c0_i32_0 : i32, i32
  }
  func.func @transform_9(%arg0: i32) -> (i32, i32) {
    %c0_i32 = arith.constant 0 : i32
    %c0_i32_0 = arith.constant 0 : i32
    %c0_i32_1 = arith.constant 0 : i32
    return %c0_i32, %c0_i32_0 : i32, i32
  }
  func.func @transform_10(%arg0: i32) -> (i32, i32) {
    %c0_i32 = arith.constant 0 : i32
    %c0_i32_0 = arith.constant 0 : i32
    %c0_i32_1 = arith.constant 0 : i32
    return %c0_i32, %c0_i32_0 : i32, i32
  }
  func.func @transform_11(%arg0: i32) -> (i32, i32) {
    %c0_i32 = arith.constant 0 : i32
    %c0_i32_0 = arith.constant 0 : i32
    %c0_i32_1 = arith.constant 0 : i32
    return %c0_i32, %c0_i32_0 : i32, i32
  }
  func.func @transform_12(%arg0: i32) -> (i32, i32) {
    %c0_i32 = arith.constant 0 : i32
    %c0_i32_0 = arith.constant 0 : i32
    %c0_i32_1 = arith.constant 0 : i32
    return %c0_i32, %c0_i32_0 : i32, i32
  }
  func.func @transform_13(%arg0: i32) -> (i32, i32) {
    %c0_i32 = arith.constant 0 : i32
    %c0_i32_0 = arith.constant 0 : i32
    %c0_i32_1 = arith.constant 0 : i32
    return %c0_i32, %c0_i32_0 : i32, i32
  }
  func.func @transform_14(%arg0: i32) -> (i32, i32) {
    %c0_i32 = arith.constant 0 : i32
    %c0_i32_0 = arith.constant 0 : i32
    return %arg0, %c0_i32 : i32, i32
  }
  func.func @transform_15(%arg0: i32) -> (i32, i32) {
    %c0_i32 = arith.constant 0 : i32
    %c0_i32_0 = arith.constant 0 : i32
    return %arg0, %c0_i32 : i32, i32
  }
}

</mosaic_0001>

<bundles_post_ra>
// kernel: vae_forward.1
= control target key start
LH: loop header
LB: loop body
LE: loop exit
PB: predicated region body
PF: predicated region fallthrough
CT: control target
= control target key end

     0   :  { %21 = vsyncpa [#allocation3], 0  ;;  %s1799_s0 = inlined_call_operand.vmem [shape: bf16[8,256], index: 0, kind: input, shape index: {}]   ;;  %s1800_s1 = inlined_call_operand.vmem [shape: f32[8,8], index: 1, kind: input, shape index: {}]   ;;  %s1801_s2 = inlined_call_operand.hbm [shape: bf16[256,256], index: 2, kind: input, shape index: {}]   ;;  %s1802_s3 = inlined_call_operand.vmem [shape: f32[1,256], index: 3, kind: input, shape index: {}]   ;;  %s1803_s4 = inlined_call_operand.vmem [shape: bf16[256,128], index: 4, kind: input, shape index: {}]   ;;  %s1804_s5 = inlined_call_operand.vmem [shape: f32[1,128], index: 5, kind: input, shape index: {}]   ;;  %s1805_s6 = inlined_call_operand.vmem [shape: bf16[128,16], index: 6, kind: input, shape index: {}]   ;;  %s1806_s7 = inlined_call_operand.vmem [shape: f32[1,16], index: 7, kind: input, shape index: {}]   ;;  %s1807_s8 = inlined_call_operand.vmem [shape: bf16[8,128], index: 8, kind: input, shape index: {}]   ;;  %s1808_s9 = inlined_call_operand.vmem [shape: f32[1,128], index: 9, kind: input, shape index: {}]   ;;  %s1809_s10 = inlined_call_operand.hbm [shape: bf16[128,256], index: 10, kind: input, shape index: {}]   ;;  %s1810_s11 = inlined_call_operand.vmem [shape: f32[1,256], index: 11, kind: input, shape index: {}]   ;;  %s1811_s12 = inlined_call_operand.hbm [shape: bf16[256,256], index: 12, kind: input, shape index: {}]   ;;  %s1812_s13 = inlined_call_operand.vmem [shape: f32[1,256], index: 13, kind: input, shape index: {}]   ;;  %s1813_s14 = inlined_call_operand.vmem [shape: f32[8,16], index: 14, kind: output, shape index: {0}]   ;;  %s1814_s15 = inlined_call_operand.vmem [shape: f32[8,256], index: 15, kind: output, shape index: {1}]  }
   0x1   :  { %22 = vsyncpa [#allocation5], 0  ;;  %s1534_s18 = smov [#allocation4]   ;;  %s1535_s20 = smov [#allocation2]  }
   0x2   :  { %s58_s19 = sshll.u32 %s1534_s18, 4  ;;  %s32_s21 = sshll.u32 %s1535_s20, 4  ;;  %s59_s19 = int_to_ptr.vmem [resolvable:$true] %s58_s19  ;;  %s1623_s21 = int_to_ptr.vmem [resolvable:$true] %s32_s21 }
   0x3   :  { %s1464_s24 = scalar_lea.hbm %s1809_s10, 2048 }
   0x4   :  { %p1465_p0 = scmp.ne.s32.totalorder %s1809_s10, %s1464_s24  ;;  %p1468_p1 = scmp.lt.u32.totalorder %s1464_s24, %s1809_s10 }
   0x6   :  { %p1470_p2 = pnand %p1468_p1, %p1465_p0 }
   0x8   :  { %1473 = shalt.err (!%p1470_p2)
}
   0x9   :  { %s1474_s29 = scalar_lea.vmem %s59_s19, 2048  ;;  %p1479_p4 = scmp.lt.s32.totalorder %s59_s19, %s59_s19 }
   0xa   :  { %p1475_p3 = scmp.ne.s32.totalorder %s59_s19, %s1474_s29  ;;  %p1480_p5 = scmp.lt.s32.totalorder %s1474_s29, %s1474_s29 }
   0xc   :  { %p1481_p6 = por %p1480_p5, %p1479_p4 }
   0xe   :  { %p1482_p7 = pnand %p1481_p6, %p1475_p3 }
  0x10   :  { %1485 = shalt.err (!%p1482_p7)
}
  0x11   :  { %s1536_s30 = smov 128   ;;  %s1537_s16 = smov 8  }
  0x12   :  { %64 = dma.hbm_to_vmem [thread:$0]  %s1809_s10, 2048, %s59_s19, [#allocation5], %s1536_s30, %s1536_s30, %s1537_s16  }
  0x13   :  { %s1486_s23 = scalar_lea.hbm %s1801_s2, 4096 }
  0x14   :  { %p1487_p8 = scmp.ne.s32.totalorder %s1801_s2, %s1486_s23  ;;  %p1490_p9 = scmp.lt.u32.totalorder %s1486_s23, %s1801_s2 }
  0x16   :  { %p1492_p10 = pnand %p1490_p9, %p1487_p8 }
  0x18   :  { %1495 = shalt.err (!%p1492_p10)
}
  0x19   :  { %s1496_s28 = scalar_lea.vmem %s1623_s21, 4096  ;;  %p1501_p12 = scmp.lt.s32.totalorder %s1623_s21, %s1623_s21 }
  0x1a   :  { %p1497_p11 = scmp.ne.s32.totalorder %s1623_s21, %s1496_s28  ;;  %p1502_p13 = scmp.lt.s32.totalorder %s1496_s28, %s1496_s28 }
  0x1c   :  { %p1503_p0 = por %p1502_p13, %p1501_p12 }
  0x1e   :  { %p1504_p1 = pnand %p1503_p0, %p1497_p11 }
  0x20   :  { %1507 = shalt.err (!%p1504_p1)
}
  0x21   :  { %38 = dma.hbm_to_vmem [thread:$0]  %s1801_s2, 4096, %s1623_s21, [#allocation3], %s1536_s30, %s1536_s30, %s1537_s16  }
  0x22   :  { %s1538_s29 = smov [#allocation6]   ;;  %s1508_s22 = scalar_lea.hbm %s1811_s12, 4096 }
  0x23   :  { %s72_s17 = sshll.u32 %s1538_s29, 4  ;;  %p1509_p2 = scmp.ne.s32.totalorder %s1811_s12, %s1508_s22  ;;  %s73_s17 = int_to_ptr.vmem [resolvable:$true] %s72_s17 }
  0x24   :  { %p1512_p3 = scmp.lt.u32.totalorder %s1508_s22, %s1811_s12 }
  0x26   :  { %p1514_p4 = pnand %p1512_p3, %p1509_p2 }
  0x28   :  { %1517 = shalt.err (!%p1514_p4)
}
  0x29   :  { %s1518_s27 = scalar_lea.vmem %s73_s17, 4096  ;;  %p1523_p6 = scmp.lt.s32.totalorder %s73_s17, %s73_s17 }
  0x2a   :  { %p1519_p5 = scmp.ne.s32.totalorder %s73_s17, %s1518_s27  ;;  %p1524_p7 = scmp.lt.s32.totalorder %s1518_s27, %s1518_s27 }
  0x2c   :  { %p1525_p8 = por %p1524_p7, %p1523_p6 }
  0x2e   :  { %p1526_p9 = pnand %p1525_p8, %p1519_p5 }
  0x30   :  { %1529 = shalt.err (!%p1526_p9)
}
  0x31   :  { %78 = dma.hbm_to_vmem [thread:$0]  %s1811_s12, 4096, %s73_s17, [#allocation5], %s1536_s30, %s1536_s30, %s1537_s16  }
  0x32   :  { %1530 = dma.done.wait [#allocation3], 4096  }
  0x33   :  { %1531 = vsyncadd [#allocation3], 4294963200 }
  0x34   :  { %1532 = dma.done.wait [#allocation5], 6144  }
  0x35   :  { %1533 = vsyncadd [#allocation5], 4294961152  ;;  %v1308_v0 = vld [vmem:[#allocation2 + $0x4] ss:$8 sps:$4 sm:$0xff]   ;;  %v1310_v1 = vld [vmem:[#allocation2] ss:$8 sps:$4 sm:$0xff]   ;;  %v126_v52 = vlaneseq }
  0x36   :  { %303 = vmatprep.subr.bf16.mxu0 %v1308_v0  ;;  %v1311_v2 = vld [vmem:[#allocation2 + $0x14] ss:$8 sps:$4 sm:$0xff]   ;;  %v1313_v3 = vld [vmem:[#allocation2 + $0x10] ss:$8 sps:$4 sm:$0xff]   ;;  %v1314_v4 = vld [vmem:[#allocation2 + $0x24] ss:$8 sps:$4 sm:$0xff]  }
  0x37   :  { %304 = vmatpush1.bf16.msra.mxu0 %v1310_v1  ;;  %v1316_v5 = vld [vmem:[#allocation2 + $0x20] ss:$8 sps:$4 sm:$0xff]   ;;  %v1317_v6 = vld [vmem:[#allocation2 + $0x34] ss:$8 sps:$4 sm:$0xff]   ;;  %v1319_v7 = vld [vmem:[#allocation2 + $0x30] ss:$8 sps:$4 sm:$0xff]  }
  0x38   :  { %305 = vmatprep.subr.bf16.mxu0 %v1311_v2  ;;  %v1320_v8 = vld [vmem:[#allocation2 + $0x44] ss:$8 sps:$4 sm:$0xff]   ;;  %v1322_v9 = vld [vmem:[#allocation2 + $0x40] ss:$8 sps:$4 sm:$0xff]   ;;  %v1323_v10 = vld [vmem:[#allocation2 + $0x54] ss:$8 sps:$4 sm:$0xff]  }
  0x39   :  { %v1325_v11 = vld [vmem:[#allocation2 + $0x50] ss:$8 sps:$4 sm:$0xff]   ;;  %v1326_v12 = vld [vmem:[#allocation2 + $0x64] ss:$8 sps:$4 sm:$0xff]   ;;  %v1328_v13 = vld [vmem:[#allocation2 + $0x60] ss:$8 sps:$4 sm:$0xff]  }
  0x3a   :  { %v1678_v14 = vld [vmem:[%s1799_s0] sm:$0xff]  ;;  %v1329_v15 = vld [vmem:[#allocation2 + $0x74] ss:$8 sps:$4 sm:$0xff]   ;;  %v1360_v19 = vld [vmem:[%s1803_s4 + $0x48] sm:$0xff]   ;;  %v1539_v51 = vmov 0.0   ;;  %v127_v53 = vshrl.u32 %v126_v52, 7 }
  0x3b   :  { %306 = vmatpush1.bf16.msra.mxu0 %v1313_v3  ;;  %v1129_v16 = vcombine.high %v1678_v14, %v1678_v14  ;;  %v1358_v17 = vld [vmem:[%s1803_s4 + $0x40] sm:$0xff]   ;;  %v1331_v20 = vld [vmem:[#allocation2 + $0x70] ss:$8 sps:$4 sm:$0xff]   ;;  %v1361_v21 = vld [vmem:[%s1803_s4 + $0x8] sm:$0xff]   ;;  %v1128_v46 = vcombine.low %v1678_v14, %v1678_v14  ;;  %vm1540_vm0 = vmmov 0   ;;  %vm661_vm1 = vcmask 1043456  }
  0x3c   :  { %307 = vmatprep.subr.bf16.mxu0 %v1314_v4  ;;  %v1359_v18 = vld [vmem:[%s1803_s4] sm:$0xff]   ;;  %1240 = vmatprep.subr.bf16.mxu1 %v1358_v17  ;;  %v1362_v22 = vld [vmem:[%s1803_s4 + $0x50] sm:$0xff]   ;;  %v1364_v26 = vld [vmem:[%s1803_s4 + $0x58] sm:$0xff]   ;;  %v1732_v54 = vsub.s32 0, %v127_v53  ;;  %v1737_v56 = vsub.s32 1, %v127_v53  ;;  %vm636_vm2 = vcmask 130048  }
  0x3d   :  { %335 = vmatprep.mubr.bf16.mxu0 %v1129_v16  ;;  %1241 = vmatpush3.bf16.msra.mxu1 %v1359_v18  ;;  %v1332_v23 = vld [vmem:[#allocation2 + $0x84] ss:$8 sps:$4 sm:$0xff]   ;;  %v1334_v24 = vld [vmem:[#allocation2 + $0x80] ss:$8 sps:$4 sm:$0xff]   ;;  %v1363_v25 = vld [vmem:[%s1803_s4 + $0x10] sm:$0xff]   ;;  %vm657_vm3 = vcmask 64512  }
  0x3e   :  { %1242 = vmatprep.subr.bf16.mxu1 %v1360_v19  ;;  %v1335_v27 = vld [vmem:[#allocation2 + $0x94] ss:$8 sps:$4 sm:$0xff]   ;;  %v1337_v28 = vld [vmem:[#allocation2 + $0x90] ss:$8 sps:$4 sm:$0xff]   ;;  %v1366_v30 = vld [vmem:[%s1803_s4 + $0x60] sm:$0xff]  }
  0x3f   :  { %308 = vmatpush1.bf16.msra.mxu0 %v1316_v5  ;;  %v1365_v29 = vld [vmem:[%s1803_s4 + $0x18] sm:$0xff]   ;;  %v1338_v31 = vld [vmem:[#allocation2 + $0xa4] ss:$8 sps:$4 sm:$0xff]   ;;  %v1340_v33 = vld [vmem:[#allocation2 + $0xa0] ss:$8 sps:$4 sm:$0xff]  }
  0x40   :  { %309 = vmatprep.subr.bf16.mxu0 %v1317_v6  ;;  %v1367_v32 = vld [vmem:[%s1803_s4 + $0x20] sm:$0xff]   ;;  %v1368_v34 = vld [vmem:[%s1803_s4 + $0x68] sm:$0xff]   ;;  %v1341_v35 = vld [vmem:[#allocation2 + $0xb4] ss:$8 sps:$4 sm:$0xff]  }
  0x41   :  { %1243 = vmatpush3.bf16.msra.mxu1 %v1361_v21  ;;  %v1369_v36 = vld [vmem:[%s1803_s4 + $0x28] sm:$0xff]   ;;  %v1343_v37 = vld [vmem:[#allocation2 + $0xb0] ss:$8 sps:$4 sm:$0xff]   ;;  %v1347_v40 = vld [vmem:[#allocation2 + $0xd4] ss:$8 sps:$4 sm:$0xff]  }
  0x42   :  { %1244 = vmatprep.subr.bf16.mxu1 %v1362_v22  ;;  %v1344_v38 = vld [vmem:[#allocation2 + $0xc4] ss:$8 sps:$4 sm:$0xff]   ;;  %v1346_v39 = vld [vmem:[#allocation2 + $0xc0] ss:$8 sps:$4 sm:$0xff]   ;;  %v1349_v41 = vld [vmem:[#allocation2 + $0xd0] ss:$8 sps:$4 sm:$0xff]  }
  0x43   :  { %310 = vmatpush1.bf16.msra.mxu0 %v1319_v7  ;;  %v1350_v42 = vld [vmem:[#allocation2 + $0xe4] ss:$8 sps:$4 sm:$0xff]   ;;  %v1352_v43 = vld [vmem:[#allocation2 + $0xe0] ss:$8 sps:$4 sm:$0xff]   ;;  %v1353_v44 = vld [vmem:[#allocation2 + $0xf4] ss:$8 sps:$4 sm:$0xff]  }
  0x44   :  { %311 = vmatprep.subr.bf16.mxu0 %v1320_v8  ;;  %v1355_v45 = vld [vmem:[#allocation2 + $0xf0] ss:$8 sps:$4 sm:$0xff]   ;;  %v124_v55 = vld [vmem:[%s1802_s3] sm:$0x3]  ;;  %v1375_v6 = vld [vmem:[%s1805_s6 + $0x8] sm:$0xff]  }
  0x45   :  { %1245 = vmatpush3.bf16.msra.mxu1 %v1363_v25  ;;  %v1370_v47 = vld [vmem:[%s1803_s4 + $0x70] sm:$0xff]   ;;  %v1372_v49 = vld [vmem:[%s1803_s4 + $0x78] sm:$0xff]   ;;  %v129_v57 = vrot.slane %v124_v55, %v1732_v54  ;;  %v133_v58 = vrot.slane %v124_v55, %v1737_v56  ;;  %v1374_v4 = vld [vmem:[%s1805_s6] sm:$0xff]   ;;  %v1542_v55 = vmov 0  }
  0x46   :  { %1246 = vmatprep.subr.bf16.mxu1 %v1364_v26  ;;  %v1371_v48 = vld [vmem:[%s1803_s4 + $0x30] sm:$0xff]   ;;  %v1373_v50 = vld [vmem:[%s1803_s4 + $0x38] sm:$0xff]   ;;  %v1162_v14 = vld [vmem:[%s1804_s5] ss:$0 sm:$0xff] }
  0x47   :  { %312 = vmatpush1.bf16.msra.mxu0 %v1322_v9  ;;  %v1376_v7 = vld [vmem:[%s1805_s6 + $0x10] sm:$0xff]   ;;  %v1377_v8 = vld [vmem:[%s1805_s6 + $0x18] sm:$0xff]   ;;  %v1378_v9 = vld [vmem:[%s1805_s6 + $0x20] sm:$0xff]  }
  0x48   :  { %313 = vmatprep.subr.bf16.mxu0 %v1323_v10  ;;  %v1379_v10 = vld [vmem:[%s1805_s6 + $0x28] sm:$0xff]   ;;  %v649_v22 = vld [vmem:[%s1807_s8] sm:$0xf]  ;;  %s1541_s8 = smov 120   ;;  %v1405_v52 = vld [vmem:[#allocation4 + $0x74] ss:$8 sps:$4 sm:$0xff]  }
  0x49   :  { %1247 = vmatpush3.bf16.msra.mxu1 %v1365_v29  ;;  %v1403_v53 = vld [vmem:[#allocation4 + $0x70] ss:$8 sps:$4 sm:$0xff]  }
  0x4a   :  { %1248 = vmatprep.subr.bf16.mxu1 %v1366_v30 }
  0x4b   :  { %314 = vmatpush1.bf16.msra.mxu0 %v1325_v11  ;;  %v1380_v11 = vld [vmem:[%s1805_s6 + $0x30] sm:$0xff]  }
  0x4c   :  { %315 = vmatprep.subr.bf16.mxu0 %v1326_v12  ;;  %v1381_v12 = vld [vmem:[%s1805_s6 + $0x38] sm:$0xff]  }
  0x4d   :  { %1249 = vmatpush3.bf16.msra.mxu1 %v1367_v32  ;;  %v1384_v32 = vld [vmem:[#allocation4 + $0x4] ss:$8 sps:$4 sm:$0xff]  }
  0x4e   :  { %1250 = vmatprep.subr.bf16.mxu1 %v1368_v34  ;;  %v638_v34 = vld [vmem:[%s1800_s1] sm:$0xff] }
  0x4f   :  { %316 = vmatpush1.bf16.msra.mxu0 %v1328_v13 }
  0x50   :  { %317 = vmatprep.subr.bf16.mxu0 %v1329_v15 }
  0x51   :  { %1251 = vmatpush3.bf16.msra.mxu1 %v1369_v36 }
  0x52   :  { %1252 = vmatprep.subr.bf16.mxu1 %v1370_v47  ;;  %v1394_v47 = vld [vmem:[#allocation4 + $0x40] ss:$8 sps:$4 sm:$0xff]  }
  0x53   :  { %318 = vmatpush1.bf16.msra.mxu0 %v1331_v20 }
  0x54   :  { %319 = vmatprep.subr.bf16.mxu0 %v1332_v23  ;;  %v663_v23 = vsel %vm661_vm1, %v649_v22, 0 }
  0x55   :  { %1253 = vmatpush3.bf16.msra.mxu1 %v1371_v48  ;;  %v1399_v48 = vld [vmem:[#allocation4 + $0x54] ss:$8 sps:$4 sm:$0xff]  }
  0x56   :  { %1254 = vmatprep.subr.bf16.mxu1 %v1372_v49  ;;  %v1397_v49 = vld [vmem:[#allocation4 + $0x50] ss:$8 sps:$4 sm:$0xff]  }
  0x57   :  { %320 = vmatpush1.bf16.msra.mxu0 %v1334_v24  ;;  %v1179_v24 = vld [vmem:[%s1806_s7] ss:$0 sm:$0xff] }
  0x58   :  { %321 = vmatprep.subr.bf16.mxu0 %v1335_v27 }
  0x59   :  { %1255 = vmatpush3.bf16.msra.mxu1 %v1373_v50  ;;  %v1402_v50 = vld [vmem:[#allocation4 + $0x64] ss:$8 sps:$4 sm:$0xff]  }
  0x5a   :  { %1273 = vmatprep.subr.bf16.mxu1 %v1539_v51 }
  0x5b   :  { %322 = vmatpush1.bf16.msra.mxu0 %v1337_v28 }
  0x5c   :  { %323 = vmatprep.subr.bf16.mxu0 %v1338_v31 }
  0x5f   :  { %324 = vmatpush1.bf16.msra.mxu0 %v1340_v33 }
  0x60   :  { %325 = vmatprep.subr.bf16.mxu0 %v1341_v35 }
  0x63   :  { %326 = vmatpush1.bf16.msra.mxu0 %v1343_v37 }
  0x64   :  { %327 = vmatprep.subr.bf16.mxu0 %v1344_v38  ;;  %v1382_v38 = vld [vmem:[#allocation4] ss:$8 sps:$4 sm:$0xff]  }
  0x67   :  { %328 = vmatpush1.bf16.msra.mxu0 %v1346_v39 }
  0x68   :  { %329 = vmatprep.subr.bf16.mxu0 %v1347_v40  ;;  %v1387_v40 = vld [vmem:[#allocation4 + $0x14] ss:$8 sps:$4 sm:$0xff]  }
  0x6b   :  { %330 = vmatpush1.bf16.msra.mxu0 %v1349_v41  ;;  %v1385_v41 = vld [vmem:[#allocation4 + $0x10] ss:$8 sps:$4 sm:$0xff]  }
  0x6c   :  { %331 = vmatprep.subr.bf16.mxu0 %v1350_v42  ;;  %v1390_v42 = vld [vmem:[#allocation4 + $0x24] ss:$8 sps:$4 sm:$0xff]  }
  0x6f   :  { %332 = vmatpush1.bf16.msra.mxu0 %v1352_v43  ;;  %v1388_v43 = vld [vmem:[#allocation4 + $0x20] ss:$8 sps:$4 sm:$0xff]  }
  0x70   :  { %333 = vmatprep.subr.bf16.mxu0 %v1353_v44  ;;  %v1393_v44 = vld [vmem:[#allocation4 + $0x34] ss:$8 sps:$4 sm:$0xff]  }
  0x73   :  { %334 = vmatpush1.bf16.msra.mxu0 %v1355_v45  ;;  %v1391_v45 = vld [vmem:[#allocation4 + $0x30] ss:$8 sps:$4 sm:$0xff]  }
  0x76   :  { %336 = vmatmul.mubr.bf16.vlgmr.msra.gmra.mrb[0].mxu0 %v1128_v46  ;;  %v1396_v46 = vld [vmem:[#allocation4 + $0x44] ss:$8 sps:$4 sm:$0xff]  }
 0x149   :  { %v337_v59 = vpop.f32.mrb[0].mxu0 }
 0x14a   :  { %v338_v60 = vadd.f32 %v337_v59, %v129_v57  ;;  %v339_v61 = vpop.f32.mrb[1].mxu0  ;;  %v1406_v57 = vld [vmem:[#allocation6] ss:$8 sps:$4 sm:$0xff]   ;;  %v1411_v59 = vld [vmem:[#allocation6 + $0x14] ss:$8 sps:$4 sm:$0xff]  }
 0x14b   :  { %v340_v62 = vadd.f32 %v339_v61, %v133_v58  ;;  %v341_v63 = vpop.f32.mrb[2].mxu0  ;;  %v1408_v58 = vld [vmem:[#allocation6 + $0x4] ss:$8 sps:$4 sm:$0xff]  }
 0x14c   :  { %v344_v0 = vmax.f32 %v338_v60, 0.0  ;;  %v342_v1 = vpop.f32.mrb[3].mxu0  ;;  %1063 = vmatprep.subr.bf16.mxu0 %v1408_v58  ;;  %v1409_v60 = vld [vmem:[#allocation6 + $0x10] ss:$8 sps:$4 sm:$0xff]   ;;  %v1414_v61 = vld [vmem:[#allocation6 + $0x24] ss:$8 sps:$4 sm:$0xff]  }
 0x14d   :  { %v345_v2 = vmax.f32 %v340_v62, 0.0  ;;  %1064 = vmatpush1.bf16.msra.mxu0 %v1406_v57  ;;  %v1412_v62 = vld [vmem:[#allocation6 + $0x20] ss:$8 sps:$4 sm:$0xff]   ;;  %v1417_v63 = vld [vmem:[#allocation6 + $0x34] ss:$8 sps:$4 sm:$0xff]  }
 0x14e   :  { %v346_v5 = vpack.c.bf16 %v344_v0, %v344_v0  ;;  %1065 = vmatprep.subr.bf16.mxu0 %v1411_v59  ;;  %v1415_v0 = vld [vmem:[#allocation6 + $0x30] ss:$8 sps:$4 sm:$0xff]   ;;  %v1420_v1 = vld [vmem:[#allocation6 + $0x44] ss:$8 sps:$4 sm:$0xff]  }
 0x14f   :  { %v347_v3 = vpack.c.bf16 %v345_v2, %v345_v2  ;;  %v1418_v2 = vld [vmem:[#allocation6 + $0x40] ss:$8 sps:$4 sm:$0xff]  }
 0x151   :  { %515 = vmatprep.mubr.bf16.mxu1 %v347_v3  ;;  %1066 = vmatpush1.bf16.msra.mxu0 %v1409_v60  ;;  %v1423_v3 = vld [vmem:[#allocation6 + $0x54] ss:$8 sps:$4 sm:$0xff]  }
 0x152   :  { %516 = vmatmul.mubr.bf16.vlgmr.msra.gmra.mrb[0].mxu1 %v346_v5  ;;  %1067 = vmatprep.subr.bf16.mxu0 %v1414_v61  ;;  %v1426_v5 = vld [vmem:[#allocation6 + $0x64] ss:$8 sps:$4 sm:$0xff]  }
 0x153   :  { %1274 = vmatpush3.bf16.msra.mxu1 %v1374_v4  ;;  %1289 = vmatprep.mubr.msk.bf16.mxu1 %vm1540_vm0, %v1539_v51  ;;  %v1421_v4 = vld [vmem:[#allocation6 + $0x50] ss:$8 sps:$4 sm:$0xff]  }
 0x154   :  { %1275 = vmatprep.subr.bf16.mxu1 %v1539_v51 }
 0x155   :  { %1068 = vmatpush1.bf16.msra.mxu0 %v1412_v62 }
 0x156   :  { %1069 = vmatprep.subr.bf16.mxu0 %v1417_v63 }
 0x157   :  { %1276 = vmatpush3.bf16.msra.mxu1 %v1375_v6  ;;  %v1424_v6 = vld [vmem:[#allocation6 + $0x60] ss:$8 sps:$4 sm:$0xff]  }
 0x158   :  { %1277 = vmatprep.subr.bf16.mxu1 %v1539_v51 }
 0x159   :  { %1070 = vmatpush1.bf16.msra.mxu0 %v1415_v0 }
 0x15a   :  { %1071 = vmatprep.subr.bf16.mxu0 %v1420_v1 }
 0x15b   :  { %1278 = vmatpush3.bf16.msra.mxu1 %v1376_v7  ;;  %v1429_v7 = vld [vmem:[#allocation6 + $0x74] ss:$8 sps:$4 sm:$0xff]  }
 0x15c   :  { %1279 = vmatprep.subr.bf16.mxu1 %v1539_v51 }
 0x15d   :  { %1072 = vmatpush1.bf16.msra.mxu0 %v1418_v2 }
 0x15e   :  { %1073 = vmatprep.subr.bf16.mxu0 %v1423_v3 }
 0x15f   :  { %1280 = vmatpush3.bf16.msra.mxu1 %v1377_v8  ;;  %v1427_v8 = vld [vmem:[#allocation6 + $0x70] ss:$8 sps:$4 sm:$0xff]  }
 0x160   :  { %1281 = vmatprep.subr.bf16.mxu1 %v1539_v51 }
 0x161   :  { %1074 = vmatpush1.bf16.msra.mxu0 %v1421_v4 }
 0x162   :  { %1075 = vmatprep.subr.bf16.mxu0 %v1426_v5 }
 0x163   :  { %1282 = vmatpush3.bf16.msra.mxu1 %v1378_v9  ;;  %v1432_v9 = vld [vmem:[#allocation6 + $0x84] ss:$8 sps:$4 sm:$0xff]  }
 0x164   :  { %1283 = vmatprep.subr.bf16.mxu1 %v1539_v51 }
 0x165   :  { %1076 = vmatpush1.bf16.msra.mxu0 %v1424_v6 }
 0x166   :  { %1077 = vmatprep.subr.bf16.mxu0 %v1429_v7 }
 0x167   :  { %1284 = vmatpush3.bf16.msra.mxu1 %v1379_v10  ;;  %v1430_v10 = vld [vmem:[#allocation6 + $0x80] ss:$8 sps:$4 sm:$0xff]  }
 0x168   :  { %1285 = vmatprep.subr.bf16.mxu1 %v1539_v51 }
 0x169   :  { %1078 = vmatpush1.bf16.msra.mxu0 %v1427_v8 }
 0x16a   :  { %1079 = vmatprep.subr.bf16.mxu0 %v1432_v9 }
 0x16b   :  { %1286 = vmatpush3.bf16.msra.mxu1 %v1380_v11  ;;  %v1435_v11 = vld [vmem:[#allocation6 + $0x94] ss:$8 sps:$4 sm:$0xff]  }
 0x16c   :  { %1287 = vmatprep.subr.bf16.mxu1 %v1539_v51 }
 0x16d   :  { %1080 = vmatpush1.bf16.msra.mxu0 %v1430_v10 }
 0x16e   :  { %1081 = vmatprep.subr.bf16.mxu0 %v1435_v11 }
 0x16f   :  { %1288 = vmatpush3.bf16.msra.mxu1 %v1381_v12  ;;  %v1433_v12 = vld [vmem:[#allocation6 + $0x90] ss:$8 sps:$4 sm:$0xff]  }
 0x170   :  { %1293 = vmatprep.subr.bf16.mxu1 %v1539_v51 }
 0x171   :  { %1082 = vmatpush1.bf16.msra.mxu0 %v1433_v12 }
 0x225   :  { %v1256_v13 = vpop.f32.mrb[0].mxu1 }
 0x226   :  { %v1257_v15 = vpop.f32.mrb[1].mxu1 }
 0x227   :  { %v1258_v16 = vadd.f32 %v1257_v15, %v1256_v13  ;;  %v1259_v17 = vpop.f32.mrb[2].mxu1  ;;  %v1438_v13 = vld [vmem:[#allocation6 + $0xa4] ss:$8 sps:$4 sm:$0xff]   ;;  %v1441_v15 = vld [vmem:[#allocation6 + $0xb4] ss:$8 sps:$4 sm:$0xff]  }
 0x228   :  { %v1260_v18 = vpop.f32.mrb[3].mxu1  ;;  %1083 = vmatprep.subr.bf16.mxu0 %v1438_v13  ;;  %v1444_v17 = vld [vmem:[#allocation6 + $0xc4] ss:$8 sps:$4 sm:$0xff]  }
 0x229   :  { %v518_v19 = vadd.f32 %v1258_v16, %v1162_v14  ;;  %v1436_v14 = vld [vmem:[#allocation6 + $0xa0] ss:$8 sps:$4 sm:$0xff]   ;;  %v1439_v16 = vld [vmem:[#allocation6 + $0xb0] ss:$8 sps:$4 sm:$0xff]  }
 0x22a   :  { %1084 = vmatpush1.bf16.msra.mxu0 %v1436_v14  ;;  %v1442_v18 = vld [vmem:[#allocation6 + $0xc0] ss:$8 sps:$4 sm:$0xff]  }
 0x22b   :  { %v523_v20 = vmax.f32 %v518_v19, 0.0  ;;  %1085 = vmatprep.subr.bf16.mxu0 %v1441_v15  ;;  %v1447_v19 = vld [vmem:[#allocation6 + $0xd4] ss:$8 sps:$4 sm:$0xff]  }
 0x22d   :  { %v524_v21 = vpack.c.bf16 %v523_v20, %v523_v20  ;;  %v1445_v20 = vld [vmem:[#allocation6 + $0xd0] ss:$8 sps:$4 sm:$0xff]  }
 0x22e   :  { %1086 = vmatpush1.bf16.msra.mxu0 %v1439_v16 }
 0x22f   :  { %1290 = vmatmul.mubr.bf16.vlgmr.msra.gmra.mrb[4].mxu1 %v524_v21  ;;  %1087 = vmatprep.subr.bf16.mxu0 %v1444_v17  ;;  %v1188_v21 = vld [vmem:[%s1808_s9] ss:$0 sm:$0xff] }
 0x230   :  { %1295 = vmatprep.mubr.msk.bf16.mxu1 %vm1540_vm0, %v1539_v51  ;;  %1294 = vmatpush3.bf16.msra.mxu1 %v663_v23  ;;  %v1400_v51 = vld [vmem:[#allocation4 + $0x60] ss:$8 sps:$4 sm:$0xff]  }
 0x231   :  { %814 = vmatprep.subr.bf16.mxu1 %v1384_v32  ;;  %v722_v32 = vld [vmem:[%s1810_s11] sm:$0x3] }
 0x232   :  { %1088 = vmatpush1.bf16.msra.mxu0 %v1442_v18 }
 0x233   :  { %1089 = vmatprep.subr.bf16.mxu0 %v1447_v19 }
 0x236   :  { %1090 = vmatpush1.bf16.msra.mxu0 %v1445_v20 }
 0x302   :  { %v630_v25 = vpop.f32.mrb[4].mxu1 }
 0x303   :  { %v631_v26 = vadd.f32 %v1179_v24, %v630_v25  ;;  %v1291_v27 = vpop.f32.mrb[5].mxu1 }
 0x304   :  { %v633_v28 = vpop.f32.mrb[6].mxu1 }
 0x305   :  { %637 = vst.msk [vmem:[%s1813_s14] sm:$0xff] %vm636_vm2, %v631_v26  ;;  %v639_v29 = vmul.f32 0.5, %v631_v26  ;;  %v1292_v30 = vpop.f32.mrb[7].mxu1  ;;  %v1450_v28 = vld [vmem:[#allocation6 + $0xe4] ss:$8 sps:$4 sm:$0xff]  }
 0x306   :  { %1091 = vmatprep.subr.bf16.mxu0 %v1450_v28  ;;  %v1453_v30 = vld [vmem:[#allocation6 + $0xf4] ss:$8 sps:$4 sm:$0xff]  }
 0x307   :  { %v640_v31 = vmul.f32 1.442695, %v639_v29  ;;  %v1448_v29 = vld [vmem:[#allocation6 + $0xe0] ss:$8 sps:$4 sm:$0xff]  }
 0x308   :  { %1092 = vmatpush1.bf16.msra.mxu0 %v1448_v29 }
 0x309   :  { %1454 = vpow2.f32 %v640_v31  ;;  %v1451_v31 = vld [vmem:[#allocation6 + $0xf0] ss:$8 sps:$4 sm:$0xff]   ;;  %1093 = vmatprep.subr.bf16.mxu0 %v1453_v30 }
 0x30c   :  { %1094 = vmatpush1.bf16.msra.mxu0 %v1451_v31 }
 0x313   :  { %v1455_v33 = vpop.eup %1454 }
 0x314   :  { %643 = vrot.lane.b32.xlu0 %v1455_v33, %s1541_s8  ;;  %v727_v33 = vrot.slane %v722_v32, %v1732_v54 }
 0x386   :  { %v644_v35 = vpop.permute.xlu0 %643 }
 0x387   :  { %v646_v36 = vmul.f32 %v644_v35, %v638_v34  ;;  %v731_v34 = vrot.slane %v722_v32, %v1737_v56 }
 0x389   :  { %v647_v37 = vadd.f32 %v646_v36, %v631_v26 }
 0x38b   :  { %v648_v39 = vpack.c.bf16 %v647_v37, %v647_v37 }
 0x38d   :  { %1296 = vmatmul.mubr.msk.bf16.vlgmr.msra.gmra.mrb[8].mxu1 %vm657_vm3, %v648_v39 }
 0x38e   :  { %815 = vmatpush1.bf16.msra.mxu1 %v1382_v38  ;;  %846 = vmatprep.mubr.bf16.mxu1 %v1542_v55 }
 0x38f   :  { %816 = vmatprep.subr.bf16.mxu1 %v1387_v40 }
 0x392   :  { %817 = vmatpush1.bf16.msra.mxu1 %v1385_v41 }
 0x393   :  { %818 = vmatprep.subr.bf16.mxu1 %v1390_v42 }
 0x396   :  { %819 = vmatpush1.bf16.msra.mxu1 %v1388_v43 }
 0x397   :  { %820 = vmatprep.subr.bf16.mxu1 %v1393_v44 }
 0x39a   :  { %821 = vmatpush1.bf16.msra.mxu1 %v1391_v45  ;;  %v891_v45 = vld [vmem:[%s1812_s13] sm:$0x3] }
 0x39b   :  { %822 = vmatprep.subr.bf16.mxu1 %v1396_v46  ;;  %v896_v46 = vrot.slane %v891_v45, %v1732_v54 }
 0x39e   :  { %823 = vmatpush1.bf16.msra.mxu1 %v1394_v47  ;;  %v900_v47 = vrot.slane %v891_v45, %v1737_v56 }
 0x39f   :  { %824 = vmatprep.subr.bf16.mxu1 %v1399_v48 }
 0x3a2   :  { %825 = vmatpush1.bf16.msra.mxu1 %v1397_v49 }
 0x3a3   :  { %826 = vmatprep.subr.bf16.mxu1 %v1402_v50 }
 0x3a6   :  { %827 = vmatpush1.bf16.msra.mxu1 %v1400_v51 }
 0x3a7   :  { %828 = vmatprep.subr.bf16.mxu1 %v1405_v52 }
 0x3aa   :  { %829 = vmatpush1.bf16.msra.mxu1 %v1403_v53 }
 0x460   :  { %v699_v22 = vpop.f32.mrb[8].mxu1 }
 0x461   :  { %v700_v23 = vadd.f32 %v1188_v21, %v699_v22  ;;  %v1297_v24 = vpop.f32.mrb[9].mxu1 }
 0x462   :  { %v702_v25 = vpop.f32.mrb[10].mxu1 }
 0x463   :  { %v705_v26 = vpack.c.bf16 %v700_v23, %v700_v23  ;;  %v1298_v27 = vpop.f32.mrb[11].mxu1 }
 0x465   :  { %847 = vmatmul.mubr.bf16.vlgmr.msra.gmra.mrb[12].mxu1 %v705_v26 }
 0x538   :  { %v848_v35 = vpop.f32.mrb[12].mxu1 }
 0x539   :  { %v849_v36 = vadd.f32 %v848_v35, %v727_v33  ;;  %v850_v37 = vpop.f32.mrb[13].mxu1 }
 0x53a   :  { %v851_v38 = vadd.f32 %v850_v37, %v731_v34  ;;  %v852_v39 = vpop.f32.mrb[14].mxu1 }
 0x53b   :  { %v855_v40 = vmax.f32 %v849_v36, 0.0  ;;  %v853_v41 = vpop.f32.mrb[15].mxu1 }
 0x53c   :  { %v856_v42 = vmax.f32 %v851_v38, 0.0 }
 0x53d   :  { %v857_v44 = vpack.c.bf16 %v855_v40, %v855_v40 }
 0x53e   :  { %v858_v43 = vpack.c.bf16 %v856_v42, %v856_v42 }
 0x540   :  { %1095 = vmatprep.mubr.bf16.mxu0 %v858_v43 }
 0x541   :  { %1096 = vmatmul.mubr.bf16.vlgmr.msra.gmra.mrb[4].mxu0 %v857_v44 }
 0x614   :  { %v1097_v48 = vpop.f32.mrb[4].mxu0 }
 0x615   :  { %v1098_v49 = vadd.f32 %v1097_v48, %v896_v46  ;;  %v1099_v50 = vpop.f32.mrb[5].mxu0 }
 0x616   :  { %v1100_v51 = vadd.f32 %v1099_v50, %v900_v47  ;;  %v1101_v52 = vpop.f32.mrb[6].mxu0 }
 0x617   :  { %v1238_v53 = vmul.f32 -1.442695, %v1098_v49  ;;  %v1102_v55 = vpop.f32.mrb[7].mxu0 }
 0x618   :  { %v1239_v57 = vmul.f32 -1.442695, %v1100_v51 }
 0x619   :  { %1456 = vpow2.f32 %v1238_v53 }
 0x61a   :  { %1458 = vpow2.f32 %v1239_v57 }
 0x623   :  { %v1457_v58 = vpop.eup %1456 }
 0x624   :  { %v1459_v59 = vpop.eup %1458  ;;  %v1110_v60 = vadd.f32 1.0, %v1457_v58 }
 0x625   :  { %v1111_v61 = vadd.f32 1.0, %v1459_v59 }
 0x626   :  { %1460 = vrcp.f32 %v1110_v60 }
 0x627   :  { %1462 = vrcp.f32 %v1111_v61 }
 0x630   :  { %v1461_v62 = vpop.eup %1460 }
 0x631   :  { %v1463_v54 = vpop.eup %1462  ;;  %1116 = vst [vmem:[%s1814_s15] sm:$0xff] %v1461_v62 }
 0x632   :  { %1117 = vst [vmem:[%s1814_s15 + $0x8] sm:$0xff] %v1463_v54 }
 0x633   :  { %1126 = vsyncpa [#allocation3], 1 }
 0x634   :  { %1127 = vsyncpa [#allocation5], 1 }

</bundles_post_ra>
